<compile_context>
chip_gen: v6e
topology: v6e:2x2x1
jax: 0.10.0
libtpu: 0.0.40
codegen_flags: <defaults>
</compile_context>

<pallas_src>
import functools

import jax
import jax.numpy as jnp
from jax.experimental import pallas as pl
from jax.experimental.pallas import tpu as pltpu


def _round_up(x, m):
    return (x + m - 1) // m * m


def _pick_tm(cin, cout, b, m, budget_bytes=24 << 20):
    """Pick the mode-tile size TM (multiple of 128) from a VMEM budget.

    Working set per lane column = (x + w + out) blocks, real+imag float32,
    double-buffered by the Pallas pipeline.
    """
    per_col = (cin * b + cin * cout + b * cout) * 2 * 4 * 2
    tm = (budget_bytes // per_col) // 128 * 128
    tm = max(128, min(int(tm), 1024))
    return min(tm, _round_up(m, 128))


def _spectral_mul_kernel(xr_ref, xi_ref, wr_ref, wi_ref, or_ref, oi_ref):
    # Block shapes (corner dim squeezed):
    #   xr/xi: (Cin, B, TM)   wr/wi: (Cin, Cout, TM)   or/oi: (B, Cout, TM)
    cin, b, tm = xr_ref.shape
    cout = wr_ref.shape[1]

    zeros = jnp.zeros((b, cout, tm), jnp.float32)

    def body(i, carry):
        acc_r, acc_i = carry
        # Per-iteration loads of just the needed 2-D slices keep vreg
        # pressure flat and let vld overlap the VPU MACs.
        xr = xr_ref[i][:, None, :]      # (B, 1, TM)
        xi = xi_ref[i][:, None, :]
        wr = wr_ref[i][None, :, :]      # (1, Cout, TM)
        wi = wi_ref[i][None, :, :]
        # Four independent multiply-accumulate chains (FMA-friendly form).
        acc_r = acc_r + xr * wr
        acc_r = acc_r - xi * wi
        acc_i = acc_i + xr * wi
        acc_i = acc_i + xi * wr
        return acc_r, acc_i

    acc_r, acc_i = jax.lax.fori_loop(0, cin, body, (zeros, zeros),
                                     unroll=min(4, cin))
    or_ref[...] = acc_r
    oi_ref[...] = acc_i


def _spectral_mul(xr, xi, wr, wi, tm):
    """xr/xi: (4, Cin, B, Mp) f32;  wr/wi: (4, Cin, Cout, Mp) f32
    -> (out_r, out_i): (4, B, Cout, Mp) f32 via Pallas."""
    four, cin, b, mp = xr.shape
    cout = wr.shape[2]
    assert four == 4 and mp % tm == 0
    n_m = mp // tm

    x_spec = pl.BlockSpec((None, cin, b, tm), lambda c, m: (c, 0, 0, m))
    w_spec = pl.BlockSpec((None, cin, cout, tm), lambda c, m: (c, 0, 0, m))
    o_spec = pl.BlockSpec((None, b, cout, tm), lambda c, m: (c, 0, 0, m))

    flops = 4 * b * cin * cout * mp * 8          # complex MAC = 4 mul + 4 add
    bytes_accessed = 4 * mp * 4 * 2 * (cin * b + cin * cout + b * cout)

    out_r, out_i = pl.pallas_call(
        _spectral_mul_kernel,
        out_shape=(
            jax.ShapeDtypeStruct((4, b, cout, mp), jnp.float32),
            jax.ShapeDtypeStruct((4, b, cout, mp), jnp.float32),
        ),
        grid=(4, n_m),
        in_specs=[x_spec, x_spec, w_spec, w_spec],
        out_specs=(o_spec, o_spec),
        compiler_params=pltpu.CompilerParams(
            dimension_semantics=("parallel", "parallel")),
        cost_estimate=pl.CostEstimate(
            flops=flops, bytes_accessed=bytes_accessed, transcendentals=0),
    )(xr, xi, wr, wi)
    return out_r, out_i


def pack_spectral_weights(w1, w2, w3, w4):
    """Hoisted (call once per parameter set, not per forward):
    stack the 4 complex weights, flatten modes, split real/imag to f32."""
    cin, cout, m1, m2, m3 = w1.shape
    w = jnp.stack([w1, w2, w3, w4], axis=0).reshape(4, cin, cout, m1 * m2 * m3)
    return jnp.real(w).astype(jnp.float32), jnp.imag(w).astype(jnp.float32)


def spectral_conv3d(x, w_r, w_i, modes1, modes2, modes3):
    """Forward pass of SpectralConv3d.

    x:        (B, Cin, S1, S2, S3) float32
    w_r, w_i: (4, Cin, Cout, m1*m2*m3) float32 (from pack_spectral_weights)
    returns   (B, Cout, S1, S2, S3) float32
    """
    B, Cin, S1, S2, S3 = x.shape
    Cout = w_r.shape[2]
    m1, m2, m3 = modes1, modes2, modes3
    M = m1 * m2 * m3
    # Non-overlap assumption of the four corner blocks (same as the reference).
    assert 2 * m1 <= S1 and 2 * m2 <= S2 and m3 <= S3 // 2 + 1

    # TODO(synk): FFT/IFFT have no Pallas equivalent — done in plain JAX.
    x_ft = jnp.fft.rfftn(x, axes=(-3, -2, -1))       # (B, Cin, S1, S2, S3//2+1)

    corners = jnp.stack(
        [
            x_ft[:, :, :m1, :m2, :m3],
            x_ft[:, :, -m1:, :m2, :m3],
            x_ft[:, :, :m1, -m2:, :m3],
            x_ft[:, :, -m1:, -m2:, :m3],
        ],
        axis=0,
    ).reshape(4, B, Cin, M)

    # Tile size + lane-dense padding of the flattened mode axis.
    tm = _pick_tm(Cin, Cout, B, M)
    mp = _round_up(M, tm)
    pad = mp - M

    # (4, B, Cin, M) -> (4, Cin, B, Mp): per-channel slices become clean
    # (B, TM) tiles inside the kernel.
    xr = jnp.pad(jnp.real(corners).astype(jnp.float32).transpose(0, 2, 1, 3),
                 ((0, 0), (0, 0), (0, 0), (0, pad)))
    xi = jnp.pad(jnp.imag(corners).astype(jnp.float32).transpose(0, 2, 1, 3),
                 ((0, 0), (0, 0), (0, 0), (0, pad)))
    wr = jnp.pad(w_r, ((0, 0), (0, 0), (0, 0), (0, pad)))
    wi = jnp.pad(w_i, ((0, 0), (0, 0), (0, 0), (0, pad)))

    out_r, out_i = _spectral_mul(xr, xi, wr, wi, tm)   # (4, B, Cout, Mp) x2

    out_blocks = (out_r[..., :M] + 1j * out_i[..., :M]).astype(jnp.complex64)
    out_blocks = out_blocks.reshape(4, B, Cout, m1, m2, m3)

    out_ft = jnp.zeros((B, Cout, S1, S2, S3 // 2 + 1), dtype=jnp.complex64)
    out_ft = out_ft.at[:, :, :m1, :m2, :m3].set(out_blocks[0])
    out_ft = out_ft.at[:, :, -m1:, :m2, :m3].set(out_blocks[1])
    out_ft = out_ft.at[:, :, :m1, -m2:, :m3].set(out_blocks[2])
    out_ft = out_ft.at[:, :, -m1:, -m2:, :m3].set(out_blocks[3])

    return jnp.fft.irfftn(out_ft, s=(S1, S2, S3),
                          axes=(-3, -2, -1)).astype(jnp.float32)


def _reference(x, w1, w2, w3, w4, m1, m2, m3):
    """Pure-JAX reference mirroring the PyTorch forward."""
    B, Cin, S1, S2, S3 = x.shape
    Cout = w1.shape[1]
    x_ft = jnp.fft.rfftn(x, axes=(-3, -2, -1))
    out_ft = jnp.zeros((B, Cout, S1, S2, S3 // 2 + 1), dtype=jnp.complex64)
    cm = lambda a, w: jnp.einsum('bixyz,ioxyz->boxyz', a, w)
    out_ft = out_ft.at[:, :, :m1, :m2, :m3].set(cm(x_ft[:, :, :m1, :m2, :m3], w1))
    out_ft = out_ft.at[:, :, -m1:, :m2, :m3].set(cm(x_ft[:, :, -m1:, :m2, :m3], w2))
    out_ft = out_ft.at[:, :, :m1, -m2:, :m3].set(cm(x_ft[:, :, :m1, -m2:, :m3], w3))
    out_ft = out_ft.at[:, :, -m1:, -m2:, :m3].set(cm(x_ft[:, :, -m1:, -m2:, :m3], w4))
    return jnp.fft.irfftn(out_ft, s=(S1, S2, S3), axes=(-3, -2, -1))


if __name__ == "__main__":
    # Small shapes consistent with the module.
    B, Cin, Cout = 2, 4, 4
    S1 = S2 = S3 = 16
    m1 = m2 = m3 = 4

    key = jax.random.PRNGKey(0)
    kx, kw = jax.random.split(key)
    x = jax.random.normal(kx, (B, Cin, S1, S2, S3), dtype=jnp.float32)

    # Deterministic weights: scale * (uniform[0,1) + i*uniform[0,1)), matching
    # torch.rand(..., dtype=torch.cfloat) in __init__.
    scale = 1.0 / (Cin * Cout)
    wkeys = jax.random.split(kw, 8)

    def make_w(kr, ki):
        wr = jax.random.uniform(kr, (Cin, Cout, m1, m2, m3), dtype=jnp.float32)
        wi = jax.random.uniform(ki, (Cin, Cout, m1, m2, m3), dtype=jnp.float32)
        return (scale * (wr + 1j * wi)).astype(jnp.complex64)

    w1 = make_w(wkeys[0], wkeys[1])
    w2 = make_w(wkeys[2], wkeys[3])
    w3 = make_w(wkeys[4], wkeys[5])
    w4 = make_w(wkeys[6], wkeys[7])

    # Hoisted once (not per forward): stack + real/imag split of the weights.
    w_r, w_i = pack_spectral_weights(w1, w2, w3, w4)
    w_r, w_i = jax.block_until_ready((w_r, w_i))

    fwd = jax.jit(functools.partial(spectral_conv3d,
                                    modes1=m1, modes2=m2, modes3=m3))
    out = jax.block_until_ready(fwd(x, w_r, w_i))

    ref = jax.block_until_ready(_reference(x, w1, w2, w3, w4, m1, m2, m3))
    assert out.shape == (B, Cout, S1, S2, S3)
    assert jnp.allclose(out, ref, atol=1e-4, rtol=1e-4)

    print("KERNEL_OK")
</pallas_src>

<mosaic_0001>
module attributes {stable_mosaic.version = 11 : i64} {
  func.func @_spectral_mul_kernel(%arg0: i32, %arg1: i32, %arg2: memref<1x4x2x128xf32, #tpu.memory_space<vmem>>, %arg3: memref<1x4x2x128xf32, #tpu.memory_space<vmem>>, %arg4: memref<1x4x4x128xf32, #tpu.memory_space<vmem>>, %arg5: memref<1x4x4x128xf32, #tpu.memory_space<vmem>>, %arg6: memref<1x2x4x128xf32, #tpu.memory_space<vmem>>, %arg7: memref<1x2x4x128xf32, #tpu.memory_space<vmem>>) attributes {dimension_semantics = [#tpu.dimension_semantics<parallel>, #tpu.dimension_semantics<parallel>], iteration_bounds = array<i64: 4, 1>, scalar_prefetch = 0 : i64, scratch_operands = 0 : i64, tpu.core_type = #tpu.core_type<tc>, window_params = [{transform_indices = @transform_0, window_bounds = array<i64: 1, 4, 2, 128>}, {transform_indices = @transform_1, window_bounds = array<i64: 1, 4, 2, 128>}, {transform_indices = @transform_2, window_bounds = array<i64: 1, 4, 4, 128>}, {transform_indices = @transform_3, window_bounds = array<i64: 1, 4, 4, 128>}, {transform_indices = @transform_4, window_bounds = array<i64: 1, 2, 4, 128>}, {transform_indices = @transform_5, window_bounds = array<i64: 1, 2, 4, 128>}]} {
    %cst = arith.constant 0.000000e+00 : f32
    %0 = vector.broadcast %cst : f32 to vector<2x4x128xf32>
    %c0_i32 = arith.constant 0 : i32
    %c0 = arith.constant 0 : index
    %1 = arith.index_cast %c0_i32 : i32 to index
    %c0_0 = arith.constant 0 : index
    %c0_1 = arith.constant 0 : index
    %2 = vector.load %arg2[%c0, %1, %c0_0, %c0_1] : memref<1x4x2x128xf32, #tpu.memory_space<vmem>>, vector<1x1x2x128xf32>
    %3 = vector.shape_cast %2 : vector<1x1x2x128xf32> to vector<2x128xf32>
    %4 = vector.shape_cast %3 : vector<2x128xf32> to vector<2x1x128xf32>
    %c0_2 = arith.constant 0 : index
    %5 = arith.index_cast %c0_i32 : i32 to index
    %c0_3 = arith.constant 0 : index
    %c0_4 = arith.constant 0 : index
    %6 = vector.load %arg3[%c0_2, %5, %c0_3, %c0_4] : memref<1x4x2x128xf32, #tpu.memory_space<vmem>>, vector<1x1x2x128xf32>
    %7 = vector.shape_cast %6 : vector<1x1x2x128xf32> to vector<2x128xf32>
    %8 = vector.shape_cast %7 : vector<2x128xf32> to vector<2x1x128xf32>
    %c0_5 = arith.constant 0 : index
    %9 = arith.index_cast %c0_i32 : i32 to index
    %c0_6 = arith.constant 0 : index
    %c0_7 = arith.constant 0 : index
    %10 = vector.load %arg4[%c0_5, %9, %c0_6, %c0_7] : memref<1x4x4x128xf32, #tpu.memory_space<vmem>>, vector<1x1x4x128xf32>
    %11 = vector.shape_cast %10 : vector<1x1x4x128xf32> to vector<4x128xf32>
    %12 = vector.shape_cast %11 : vector<4x128xf32> to vector<1x4x128xf32>
    %c0_8 = arith.constant 0 : index
    %13 = arith.index_cast %c0_i32 : i32 to index
    %c0_9 = arith.constant 0 : index
    %c0_10 = arith.constant 0 : index
    %14 = vector.load %arg5[%c0_8, %13, %c0_9, %c0_10] : memref<1x4x4x128xf32, #tpu.memory_space<vmem>>, vector<1x1x4x128xf32>
    %15 = vector.shape_cast %14 : vector<1x1x4x128xf32> to vector<4x128xf32>
    %16 = vector.shape_cast %15 : vector<4x128xf32> to vector<1x4x128xf32>
    %17 = vector.broadcast %4 : vector<2x1x128xf32> to vector<2x4x128xf32>
    %18 = vector.broadcast %12 : vector<1x4x128xf32> to vector<2x4x128xf32>
    %19 = arith.mulf %17, %18 : vector<2x4x128xf32>
    %20 = arith.addf %0, %19 : vector<2x4x128xf32>
    %21 = vector.broadcast %8 : vector<2x1x128xf32> to vector<2x4x128xf32>
    %22 = vector.broadcast %16 : vector<1x4x128xf32> to vector<2x4x128xf32>
    %23 = arith.mulf %21, %22 : vector<2x4x128xf32>
    %24 = arith.subf %20, %23 : vector<2x4x128xf32>
    %25 = vector.broadcast %4 : vector<2x1x128xf32> to vector<2x4x128xf32>
    %26 = vector.broadcast %16 : vector<1x4x128xf32> to vector<2x4x128xf32>
    %27 = arith.mulf %25, %26 : vector<2x4x128xf32>
    %28 = arith.addf %0, %27 : vector<2x4x128xf32>
    %29 = vector.broadcast %8 : vector<2x1x128xf32> to vector<2x4x128xf32>
    %30 = vector.broadcast %12 : vector<1x4x128xf32> to vector<2x4x128xf32>
    %31 = arith.mulf %29, %30 : vector<2x4x128xf32>
    %32 = arith.addf %28, %31 : vector<2x4x128xf32>
    %c1_i32 = arith.constant 1 : i32
    %c0_11 = arith.constant 0 : index
    %33 = arith.index_cast %c1_i32 : i32 to index
    %c0_12 = arith.constant 0 : index
    %c0_13 = arith.constant 0 : index
    %34 = vector.load %arg2[%c0_11, %33, %c0_12, %c0_13] : memref<1x4x2x128xf32, #tpu.memory_space<vmem>>, vector<1x1x2x128xf32>
    %35 = vector.shape_cast %34 : vector<1x1x2x128xf32> to vector<2x128xf32>
    %36 = vector.shape_cast %35 : vector<2x128xf32> to vector<2x1x128xf32>
    %c0_14 = arith.constant 0 : index
    %37 = arith.index_cast %c1_i32 : i32 to index
    %c0_15 = arith.constant 0 : index
    %c0_16 = arith.constant 0 : index
    %38 = vector.load %arg3[%c0_14, %37, %c0_15, %c0_16] : memref<1x4x2x128xf32, #tpu.memory_space<vmem>>, vector<1x1x2x128xf32>
    %39 = vector.shape_cast %38 : vector<1x1x2x128xf32> to vector<2x128xf32>
    %40 = vector.shape_cast %39 : vector<2x128xf32> to vector<2x1x128xf32>
    %c0_17 = arith.constant 0 : index
    %41 = arith.index_cast %c1_i32 : i32 to index
    %c0_18 = arith.constant 0 : index
    %c0_19 = arith.constant 0 : index
    %42 = vector.load %arg4[%c0_17, %41, %c0_18, %c0_19] : memref<1x4x4x128xf32, #tpu.memory_space<vmem>>, vector<1x1x4x128xf32>
    %43 = vector.shape_cast %42 : vector<1x1x4x128xf32> to vector<4x128xf32>
    %44 = vector.shape_cast %43 : vector<4x128xf32> to vector<1x4x128xf32>
    %c0_20 = arith.constant 0 : index
    %45 = arith.index_cast %c1_i32 : i32 to index
    %c0_21 = arith.constant 0 : index
    %c0_22 = arith.constant 0 : index
    %46 = vector.load %arg5[%c0_20, %45, %c0_21, %c0_22] : memref<1x4x4x128xf32, #tpu.memory_space<vmem>>, vector<1x1x4x128xf32>
    %47 = vector.shape_cast %46 : vector<1x1x4x128xf32> to vector<4x128xf32>
    %48 = vector.shape_cast %47 : vector<4x128xf32> to vector<1x4x128xf32>
    %49 = vector.broadcast %36 : vector<2x1x128xf32> to vector<2x4x128xf32>
    %50 = vector.broadcast %44 : vector<1x4x128xf32> to vector<2x4x128xf32>
    %51 = arith.mulf %49, %50 : vector<2x4x128xf32>
    %52 = arith.addf %24, %51 : vector<2x4x128xf32>
    %53 = vector.broadcast %40 : vector<2x1x128xf32> to vector<2x4x128xf32>
    %54 = vector.broadcast %48 : vector<1x4x128xf32> to vector<2x4x128xf32>
    %55 = arith.mulf %53, %54 : vector<2x4x128xf32>
    %56 = arith.subf %52, %55 : vector<2x4x128xf32>
    %57 = vector.broadcast %36 : vector<2x1x128xf32> to vector<2x4x128xf32>
    %58 = vector.broadcast %48 : vector<1x4x128xf32> to vector<2x4x128xf32>
    %59 = arith.mulf %57, %58 : vector<2x4x128xf32>
    %60 = arith.addf %32, %59 : vector<2x4x128xf32>
    %61 = vector.broadcast %40 : vector<2x1x128xf32> to vector<2x4x128xf32>
    %62 = vector.broadcast %44 : vector<1x4x128xf32> to vector<2x4x128xf32>
    %63 = arith.mulf %61, %62 : vector<2x4x128xf32>
    %64 = arith.addf %60, %63 : vector<2x4x128xf32>
    %c2_i32 = arith.constant 2 : i32
    %c0_23 = arith.constant 0 : index
    %65 = arith.index_cast %c2_i32 : i32 to index
    %c0_24 = arith.constant 0 : index
    %c0_25 = arith.constant 0 : index
    %66 = vector.load %arg2[%c0_23, %65, %c0_24, %c0_25] : memref<1x4x2x128xf32, #tpu.memory_space<vmem>>, vector<1x1x2x128xf32>
    %67 = vector.shape_cast %66 : vector<1x1x2x128xf32> to vector<2x128xf32>
    %68 = vector.shape_cast %67 : vector<2x128xf32> to vector<2x1x128xf32>
    %c0_26 = arith.constant 0 : index
    %69 = arith.index_cast %c2_i32 : i32 to index
    %c0_27 = arith.constant 0 : index
    %c0_28 = arith.constant 0 : index
    %70 = vector.load %arg3[%c0_26, %69, %c0_27, %c0_28] : memref<1x4x2x128xf32, #tpu.memory_space<vmem>>, vector<1x1x2x128xf32>
    %71 = vector.shape_cast %70 : vector<1x1x2x128xf32> to vector<2x128xf32>
    %72 = vector.shape_cast %71 : vector<2x128xf32> to vector<2x1x128xf32>
    %c0_29 = arith.constant 0 : index
    %73 = arith.index_cast %c2_i32 : i32 to index
    %c0_30 = arith.constant 0 : index
    %c0_31 = arith.constant 0 : index
    %74 = vector.load %arg4[%c0_29, %73, %c0_30, %c0_31] : memref<1x4x4x128xf32, #tpu.memory_space<vmem>>, vector<1x1x4x128xf32>
    %75 = vector.shape_cast %74 : vector<1x1x4x128xf32> to vector<4x128xf32>
    %76 = vector.shape_cast %75 : vector<4x128xf32> to vector<1x4x128xf32>
    %c0_32 = arith.constant 0 : index
    %77 = arith.index_cast %c2_i32 : i32 to index
    %c0_33 = arith.constant 0 : index
    %c0_34 = arith.constant 0 : index
    %78 = vector.load %arg5[%c0_32, %77, %c0_33, %c0_34] : memref<1x4x4x128xf32, #tpu.memory_space<vmem>>, vector<1x1x4x128xf32>
    %79 = vector.shape_cast %78 : vector<1x1x4x128xf32> to vector<4x128xf32>
    %80 = vector.shape_cast %79 : vector<4x128xf32> to vector<1x4x128xf32>
    %81 = vector.broadcast %68 : vector<2x1x128xf32> to vector<2x4x128xf32>
    %82 = vector.broadcast %76 : vector<1x4x128xf32> to vector<2x4x128xf32>
    %83 = arith.mulf %81, %82 : vector<2x4x128xf32>
    %84 = arith.addf %56, %83 : vector<2x4x128xf32>
    %85 = vector.broadcast %72 : vector<2x1x128xf32> to vector<2x4x128xf32>
    %86 = vector.broadcast %80 : vector<1x4x128xf32> to vector<2x4x128xf32>
    %87 = arith.mulf %85, %86 : vector<2x4x128xf32>
    %88 = arith.subf %84, %87 : vector<2x4x128xf32>
    %89 = vector.broadcast %68 : vector<2x1x128xf32> to vector<2x4x128xf32>
    %90 = vector.broadcast %80 : vector<1x4x128xf32> to vector<2x4x128xf32>
    %91 = arith.mulf %89, %90 : vector<2x4x128xf32>
    %92 = arith.addf %64, %91 : vector<2x4x128xf32>
    %93 = vector.broadcast %72 : vector<2x1x128xf32> to vector<2x4x128xf32>
    %94 = vector.broadcast %76 : vector<1x4x128xf32> to vector<2x4x128xf32>
    %95 = arith.mulf %93, %94 : vector<2x4x128xf32>
    %96 = arith.addf %92, %95 : vector<2x4x128xf32>
    %c3_i32 = arith.constant 3 : i32
    %c0_35 = arith.constant 0 : index
    %97 = arith.index_cast %c3_i32 : i32 to index
    %c0_36 = arith.constant 0 : index
    %c0_37 = arith.constant 0 : index
    %98 = vector.load %arg2[%c0_35, %97, %c0_36, %c0_37] : memref<1x4x2x128xf32, #tpu.memory_space<vmem>>, vector<1x1x2x128xf32>
    %99 = vector.shape_cast %98 : vector<1x1x2x128xf32> to vector<2x128xf32>
    %100 = vector.shape_cast %99 : vector<2x128xf32> to vector<2x1x128xf32>
    %c0_38 = arith.constant 0 : index
    %101 = arith.index_cast %c3_i32 : i32 to index
    %c0_39 = arith.constant 0 : index
    %c0_40 = arith.constant 0 : index
    %102 = vector.load %arg3[%c0_38, %101, %c0_39, %c0_40] : memref<1x4x2x128xf32, #tpu.memory_space<vmem>>, vector<1x1x2x128xf32>
    %103 = vector.shape_cast %102 : vector<1x1x2x128xf32> to vector<2x128xf32>
    %104 = vector.shape_cast %103 : vector<2x128xf32> to vector<2x1x128xf32>
    %c0_41 = arith.constant 0 : index
    %105 = arith.index_cast %c3_i32 : i32 to index
    %c0_42 = arith.constant 0 : index
    %c0_43 = arith.constant 0 : index
    %106 = vector.load %arg4[%c0_41, %105, %c0_42, %c0_43] : memref<1x4x4x128xf32, #tpu.memory_space<vmem>>, vector<1x1x4x128xf32>
    %107 = vector.shape_cast %106 : vector<1x1x4x128xf32> to vector<4x128xf32>
    %108 = vector.shape_cast %107 : vector<4x128xf32> to vector<1x4x128xf32>
    %c0_44 = arith.constant 0 : index
    %109 = arith.index_cast %c3_i32 : i32 to index
    %c0_45 = arith.constant 0 : index
    %c0_46 = arith.constant 0 : index
    %110 = vector.load %arg5[%c0_44, %109, %c0_45, %c0_46] : memref<1x4x4x128xf32, #tpu.memory_space<vmem>>, vector<1x1x4x128xf32>
    %111 = vector.shape_cast %110 : vector<1x1x4x128xf32> to vector<4x128xf32>
    %112 = vector.shape_cast %111 : vector<4x128xf32> to vector<1x4x128xf32>
    %113 = vector.broadcast %100 : vector<2x1x128xf32> to vector<2x4x128xf32>
    %114 = vector.broadcast %108 : vector<1x4x128xf32> to vector<2x4x128xf32>
    %115 = arith.mulf %113, %114 : vector<2x4x128xf32>
    %116 = arith.addf %88, %115 : vector<2x4x128xf32>
    %117 = vector.broadcast %104 : vector<2x1x128xf32> to vector<2x4x128xf32>
    %118 = vector.broadcast %112 : vector<1x4x128xf32> to vector<2x4x128xf32>
    %119 = arith.mulf %117, %118 : vector<2x4x128xf32>
    %120 = arith.subf %116, %119 : vector<2x4x128xf32>
    %121 = vector.broadcast %100 : vector<2x1x128xf32> to vector<2x4x128xf32>
    %122 = vector.broadcast %112 : vector<1x4x128xf32> to vector<2x4x128xf32>
    %123 = arith.mulf %121, %122 : vector<2x4x128xf32>
    %124 = arith.addf %96, %123 : vector<2x4x128xf32>
    %125 = vector.broadcast %104 : vector<2x1x128xf32> to vector<2x4x128xf32>
    %126 = vector.broadcast %108 : vector<1x4x128xf32> to vector<2x4x128xf32>
    %127 = arith.mulf %125, %126 : vector<2x4x128xf32>
    %128 = arith.addf %124, %127 : vector<2x4x128xf32>
    %c4_i32 = arith.constant 4 : i32
    %c0_47 = arith.constant 0 : index
    %c0_48 = arith.constant 0 : index
    %c0_49 = arith.constant 0 : index
    %c0_50 = arith.constant 0 : index
    %129 = vector.load %arg6[%c0_47, %c0_48, %c0_49, %c0_50] : memref<1x2x4x128xf32, #tpu.memory_space<vmem>>, vector<1x2x4x128xf32>
    %130 = vector.shape_cast %129 : vector<1x2x4x128xf32> to vector<2x4x128xf32>
    %131 = vector.shape_cast %120 : vector<2x4x128xf32> to vector<1x2x4x128xf32>
    tpu.vector_store %arg6[%c0_47, %c0_48, %c0_49, %c0_50], %131 {strides = array<i32>} : memref<1x2x4x128xf32, #tpu.memory_space<vmem>>, vector<1x2x4x128xf32>,
    %c0_51 = arith.constant 0 : index
    %c0_52 = arith.constant 0 : index
    %c0_53 = arith.constant 0 : index
    %c0_54 = arith.constant 0 : index
    %132 = vector.load %arg7[%c0_51, %c0_52, %c0_53, %c0_54] : memref<1x2x4x128xf32, #tpu.memory_space<vmem>>, vector<1x2x4x128xf32>
    %133 = vector.shape_cast %132 : vector<1x2x4x128xf32> to vector<2x4x128xf32>
    %134 = vector.shape_cast %128 : vector<2x4x128xf32> to vector<1x2x4x128xf32>
    tpu.vector_store %arg7[%c0_51, %c0_52, %c0_53, %c0_54], %134 {strides = array<i32>} : memref<1x2x4x128xf32, #tpu.memory_space<vmem>>, vector<1x2x4x128xf32>,
    return
  }
  func.func @transform_0(%arg0: i32, %arg1: i32) -> (i32, i32, i32, i32) {
    %c0_i32 = arith.constant 0 : i32
    %c0_i32_0 = arith.constant 0 : i32
    %c0_i32_1 = arith.constant 0 : i32
    return %arg0, %c0_i32, %c0_i32_0, %arg1 : i32, i32, i32, i32
  }
  func.func @transform_1(%arg0: i32, %arg1: i32) -> (i32, i32, i32, i32) {
    %c0_i32 = arith.constant 0 : i32
    %c0_i32_0 = arith.constant 0 : i32
    %c0_i32_1 = arith.constant 0 : i32
    return %arg0, %c0_i32, %c0_i32_0, %arg1 : i32, i32, i32, i32
  }
  func.func @transform_2(%arg0: i32, %arg1: i32) -> (i32, i32, i32, i32) {
    %c0_i32 = arith.constant 0 : i32
    %c0_i32_0 = arith.constant 0 : i32
    %c0_i32_1 = arith.constant 0 : i32
    return %arg0, %c0_i32, %c0_i32_0, %arg1 : i32, i32, i32, i32
  }
  func.func @transform_3(%arg0: i32, %arg1: i32) -> (i32, i32, i32, i32) {
    %c0_i32 = arith.constant 0 : i32
    %c0_i32_0 = arith.constant 0 : i32
    %c0_i32_1 = arith.constant 0 : i32
    return %arg0, %c0_i32, %c0_i32_0, %arg1 : i32, i32, i32, i32
  }
  func.func @transform_4(%arg0: i32, %arg1: i32) -> (i32, i32, i32, i32) {
    %c0_i32 = arith.constant 0 : i32
    %c0_i32_0 = arith.constant 0 : i32
    %c0_i32_1 = arith.constant 0 : i32
    return %arg0, %c0_i32, %c0_i32_0, %arg1 : i32, i32, i32, i32
  }
  func.func @transform_5(%arg0: i32, %arg1: i32) -> (i32, i32, i32, i32) {
    %c0_i32 = arith.constant 0 : i32
    %c0_i32_0 = arith.constant 0 : i32
    %c0_i32_1 = arith.constant 0 : i32
    return %arg0, %c0_i32, %c0_i32_0, %arg1 : i32, i32, i32, i32
  }
}

</mosaic_0001>

<bundles_post_ra>
// kernel: spectral_conv3d.1
= control target key start
LH: loop header
LB: loop body
LE: loop exit
PB: predicated region body
PF: predicated region fallthrough
CT: control target
= control target key end

     0   :  { %s1039_s18 = smov 0   ;;  %s1041_s19 = smov 0   ;;  %s1192_s0 = inlined_call_operand.vmem [shape: f32[4,4,2,128], index: 0, kind: input, shape index: {}]   ;;  %s1193_s1 = inlined_call_operand.vmem [shape: f32[4,4,2,128], index: 1, kind: input, shape index: {}]   ;;  %s1194_s2 = inlined_call_operand.vmem [shape: f32[4,4,4,128], index: 2, kind: input, shape index: {}]   ;;  %s1195_s3 = inlined_call_operand.vmem [shape: f32[4,4,4,128], index: 3, kind: input, shape index: {}]   ;;  %s1196_s4 = inlined_call_operand.vmem [shape: f32[4,2,4,128], index: 4, kind: output, shape index: {0}]   ;;  %s1197_s5 = inlined_call_operand.vmem [shape: f32[4,2,4,128], index: 5, kind: output, shape index: {1}]  }
   0x1   :  { %s1043_s20 = smov 0  }
   0x2 LB: > { %s28_s21 = sadd.s32 1, %s1002_s19  ;;  %p918_p0 = scmp.ge.s32.totalorder %s1006_s20, 1  ;;  %s1006_s20 = sphi %s1043_s20, %s16_s20   ;;  %s1002_s19 = sphi %s1041_s19, %s1199_s19   ;;  %s998_s18 = sphi %s1039_s18, %s1198_s18  }
   0x3   : > { %p30_p1 = scmp.ge.s32.totalorder %s28_s21, 4  ;;  %p256_p2 = scmp.lt.s32.totalorder %s1006_s20, 5 }
   0x5   : > { %s1201_s21 = smov (%p30_p1, %s28_s21), 0  ;;  %p257_p3 = pnand %p918_p0, %p256_p2 }
   0x6   : > { %p322_p4 = scmp.lt.s32.totalorder (!%p257_p3), %s998_s18, 3 }
   0x7   : > { %260 = sbr.rel (%p257_p3) target bundleno = 53 (0x35), region = 36 }
   0xc   : > { %v383_v0 = vlaneseq  ;;  %v1008_v1 = vmov 1966171168   ;;  %s1203_s18 = smov (!%p322_p4, %s998_s18), 3 }
   0xd   : > { %v381_v2 = vunpack.c.l.s4 %v1008_v1  ;;  %s1057_s22 = sshll.u32 %s1203_s18, 3  ;;  %s955_s23 = sshll.u32 %s1203_s18, 4 }
   0xe   : > { %v384_v3 = vshrl.u32 %v383_v0, 7  ;;  %s1063_s26 = scalar_lea.vmem %s1192_s0, %s1057_s22  ;;  %s1069_s29 = scalar_lea.vmem %s1193_s1, %s1057_s22 }
   0xf   : > { %v382_v4 = vunpack.c.0.s8 %v381_v2  ;;  %s1078_s7 = scalar_lea.vmem %s1194_s2, %s955_s23  ;;  %s1083_s10 = scalar_lea.vmem %s1195_s3, %s955_s23  ;;  %v931_v7 = vld.sshfl [vmem:[%s1063_s26] sm:$0x11 pattern:$0x75316420] }
  0x10   : > { %v1073_v6 = vsub.s32 0, %v384_v3  ;;  %v379_v8 = vcombine.high %v931_v7, %v931_v7  ;;  %v932_v10 = vld.sshfl [vmem:[%s1069_s29] sm:$0x11 pattern:$0x75316420]  ;;  %s361_s13 = scalar_lea.vmem %s1196_s4, %s1057_s22  ;;  %s369_s16 = scalar_lea.vmem %s1197_s5, %s1057_s22 }
  0x11   : > { %v1071_v5 = vsub.s32 %v382_v4, %v384_v3  ;;  %v403_v11 = vcombine.high %v932_v10, %v932_v10  ;;  %v1090_v13 = vld [vmem:[%s1078_s7] sm:$0xf]  ;;  %v1104_v25 = vld [vmem:[%s1078_s7 + $0x4] sm:$0xf]  ;;  %v1121_v39 = vld [vmem:[%s1078_s7 + $0x8] sm:$0xf] }
  0x12   : > { %v934_v14 = vld.sshfl [vmem:[%s1063_s26 + $0x2] sm:$0x11 pattern:$0x75316420]  ;;  %v1117_v37 = vld [vmem:[%s1083_s10 + $0x4] sm:$0xf] }
  0x13   : > { %v386_v9 = vrot.slane %v931_v7, %v1071_v5  ;;  %v410_v12 = vrot.slane %v932_v10, %v1071_v5  ;;  %v393_v15 = vrot.slane %v379_v8, %v1071_v5  ;;  %v1095_v16 = vld [vmem:[%s1083_s10] sm:$0xf]  ;;  %v466_v18 = vcombine.high %v934_v14, %v934_v14  ;;  %v940_v26 = vld.sshfl [vmem:[%s1063_s26 + $0x4] sm:$0x11 pattern:$0x75316420] }
  0x14   : > { %v473_v19 = vrot.slane %v934_v14, %v1071_v5  ;;  %v936_v20 = vld.sshfl [vmem:[%s1069_s29 + $0x2] sm:$0x11 pattern:$0x75316420]  ;;  %v417_v21 = vrot.slane %v403_v11, %v1071_v5  ;;  %v556_v30 = vcombine.high %v940_v26, %v940_v26  ;;  %v563_v34 = vrot.slane %v940_v26, %v1071_v5  ;;  %v1131_v48 = vld [vmem:[%s1078_s7 + $0xc] sm:$0xf] }
  0x15   : > { %v423_v17 = vrot.slane %v386_v9, %v1073_v6  ;;  %v437_v22 = vrot.slane %v410_v12, %v1073_v6  ;;  %v491_v23 = vcombine.high %v936_v20, %v936_v20  ;;  %v498_v24 = vrot.slane %v936_v20, %v1071_v5  ;;  %v942_v31 = vld.sshfl [vmem:[%s1069_s29 + $0x4] sm:$0x11 pattern:$0x75316420]  ;;  %v1134_v49 = vld [vmem:[%s1083_s10 + $0x8] sm:$0xf] }
  0x16   : > { %v480_v28 = vrot.slane %v466_v18, %v1071_v5  ;;  %v513_v29 = vrot.slane %v473_v19, %v1073_v6  ;;  %v588_v35 = vrot.slane %v942_v31, %v1071_v5  ;;  %v946_v36 = vld.sshfl [vmem:[%s1063_s26 + $0x6] sm:$0x11 pattern:$0x75316420]  ;;  %v427_v41 = vrot.slane %v393_v15, %v1073_v6  ;;  %v950_v63 = vld [vmem:[%s1083_s10 + $0xc] sm:$0xf] }
  0x17   : > { %v430_v27 = vmul.f32 %v423_v17, %v1090_v13  ;;  %v444_v32 = vmul.f32 %v437_v22, %v1095_v16  ;;  %v527_v33 = vrot.slane %v498_v24, %v1073_v6  ;;  %v653_v40 = vrot.slane %v946_v36, %v1071_v5  ;;  %v948_v47 = vld.sshfl [vmem:[%s1069_s29 + $0x6] sm:$0x11 pattern:$0x75316420] }
  0x18   : > { %v520_v38 = vmul.f32 %v1104_v25, %v513_v29  ;;  %v441_v42 = vrot.slane %v417_v21, %v1073_v6  ;;  %v603_v45 = vrot.slane %v563_v34, %v1073_v6  ;;  %v617_v46 = vrot.slane %v588_v35, %v1073_v6 }
  0x19   : > { %v446_v43 = vsub.f32 %v430_v27, %v444_v32  ;;  %v534_v44 = vmul.f32 %v1117_v37, %v527_v33  ;;  %v678_v50 = vrot.slane %v948_v47, %v1071_v5  ;;  %v693_v51 = vrot.slane %v653_v40, %v1073_v6 }
  0x1a   : > { %v431_v52 = vmul.f32 %v427_v41, %v1090_v13  ;;  %v445_v53 = vmul.f32 %v441_v42, %v1095_v16  ;;  %v610_v55 = vmul.f32 %v1121_v39, %v603_v45  ;;  %v624_v56 = vmul.f32 %v1134_v49, %v617_v46 }
  0x1b   : > { %v522_v54 = vadd.f32 %v520_v38, %v446_v43  ;;  %v505_v57 = vrot.slane %v491_v23, %v1071_v5  ;;  %v700_v58 = vmul.f32 %v1131_v48, %v693_v51  ;;  %v707_v59 = vrot.slane %v678_v50, %v1073_v6 }
  0x1c   : > { %v447_v60 = vsub.f32 %v431_v52, %v445_v53  ;;  %v517_v61 = vrot.slane %v480_v28, %v1073_v6  ;;  %v570_v1 = vrot.slane %v556_v30, %v1071_v5  ;;  %v581_v2 = vcombine.high %v942_v31, %v942_v31 }
  0x1d   : > { %v536_v62 = vsub.f32 %v522_v54, %v534_v44  ;;  %v531_v0 = vrot.slane %v505_v57, %v1073_v6  ;;  %v714_v3 = vmul.f32 %v950_v63, %v707_v59  ;;  %v646_v7 = vcombine.high %v946_v36, %v946_v36 }
  0x1e   : > { %v521_v4 = vmul.f32 %v1104_v25, %v517_v61  ;;  %v671_v8 = vcombine.high %v948_v47, %v948_v47  ;;  %v595_v11 = vrot.slane %v581_v2, %v1071_v5  ;;  %v607_v12 = vrot.slane %v570_v1, %v1073_v6 }
  0x1f   : > { %v612_v9 = vadd.f32 %v610_v55, %v536_v62  ;;  %v535_v10 = vmul.f32 %v1117_v37, %v531_v0  ;;  %v660_v15 = vrot.slane %v646_v7, %v1071_v5  ;;  %v448_v19 = vmul.f32 %v423_v17, %v1095_v16 }
  0x20   : > { %v523_v14 = vadd.f32 %v521_v4, %v447_v60  ;;  %v685_v18 = vrot.slane %v671_v8, %v1071_v5  ;;  %v611_v21 = vmul.f32 %v1121_v39, %v607_v12  ;;  %v621_v23 = vrot.slane %v595_v11, %v1073_v6 }
  0x21   : > { %v626_v20 = vsub.f32 %v612_v9, %v624_v56  ;;  %v452_v24 = vmul.f32 %v437_v22, %v1090_v13  ;;  %v697_v27 = vrot.slane %v660_v15, %v1073_v6  ;;  %v538_v30 = vmul.f32 %v1117_v37, %v513_v29 }
  0x22   : > { %v537_v26 = vsub.f32 %v523_v14, %v535_v10  ;;  %v711_v28 = vrot.slane %v685_v18, %v1073_v6  ;;  %v625_v32 = vmul.f32 %v1134_v49, %v621_v23  ;;  %v542_v17 = vmul.f32 %v1104_v25, %v527_v33 }
  0x23   : > { %v702_v31 = vadd.f32 %v700_v58, %v626_v20  ;;  %v454_v5 = vadd.f32 %v452_v24, %v448_v19  ;;  %v701_v22 = vmul.f32 %v1131_v48, %v697_v27  ;;  %v628_v38 = vmul.f32 %v1134_v49, %v603_v45 }
  0x24   : > { %v613_v34 = vadd.f32 %v611_v21, %v537_v26  ;;  %v715_v40 = vmul.f32 %v950_v63, %v711_v28  ;;  %v449_v29 = vmul.f32 %v427_v41, %v1095_v16  ;;  %v453_v43 = vmul.f32 %v441_v42, %v1090_v13 }
  0x25   : > { %v716_v35 = vsub.f32 %v702_v31, %v714_v3  ;;  %v540_v36 = vadd.f32 %v538_v30, %v454_v5  ;;  %v632_v33 = vmul.f32 %v1121_v39, %v617_v46  ;;  %v539_v47 = vmul.f32 %v1117_v37, %v517_v61 }
  0x26   : > { %v627_v6 = vsub.f32 %v613_v34, %v625_v32  ;;  %v455_v52 = vadd.f32 %v453_v43, %v449_v29  ;;  %v543_v53 = vmul.f32 %v1104_v25, %v531_v0  ;;  %v718_v55 = vmul.f32 %v950_v63, %v693_v51 }
  0x27   : > { %726 = vst [vmem:[%s361_s13] sm:$0xf] %v716_v35  ;;  %v544_v44 = vadd.f32 %v542_v17, %v540_v36  ;;  %v629_v57 = vmul.f32 %v1134_v49, %v607_v12  ;;  %v722_v13 = vmul.f32 %v1131_v48, %v707_v59  ;;  %v633_v42 = vmul.f32 %v1121_v39, %v621_v23 }
  0x28   : > { %v703_v50 = vadd.f32 %v701_v22, %v627_v6  ;;  %v541_v56 = vadd.f32 %v539_v47, %v455_v52  ;;  %v719_v25 = vmul.f32 %v950_v63, %v697_v27  ;;  %v723_v60 = vmul.f32 %v1131_v48, %v711_v28 }
  0x29   : > { %v630_v54 = vadd.f32 %v628_v38, %v544_v44 }
  0x2a   : > { %v717_v45 = vsub.f32 %v703_v50, %v715_v40  ;;  %v545_v41 = vadd.f32 %v543_v53, %v541_v56 }
  0x2b   : > { %v634_v16 = vadd.f32 %v632_v33, %v630_v54 }
  0x2c   : > { %727 = vst [vmem:[%s361_s13 + $0x4] sm:$0xf] %v717_v45  ;;  %v631_v37 = vadd.f32 %v629_v57, %v545_v41 }
  0x2d   : > { %v720_v46 = vadd.f32 %v718_v55, %v634_v16 }
  0x2e   : > { %v635_v51 = vadd.f32 %v633_v42, %v631_v37 }
  0x2f   : > { %v724_v58 = vadd.f32 %v722_v13, %v720_v46 }
  0x30   : > { %v721_v49 = vadd.f32 %v719_v25, %v635_v51 }
  0x31   : > { %728 = vst [vmem:[%s369_s16] sm:$0xf] %v724_v58 }
  0x32   : > { %v725_v61 = vadd.f32 %v723_v60, %v721_v49 }
  0x34   : > { %729 = vst [vmem:[%s369_s16 + $0x4] sm:$0xf] %v725_v61 }
  0x35 PF: > { %s16_s20 = sadd.s32 1, %s1006_s20   ;;  %s1198_s18 = smov %s1002_s19 }
  0x36   : > { %p13_p5 = scmp.ge.s32.totalorder %s16_s20, 6   ;;  %s1199_s19 = smov %s1201_s21 }
  0x38   :  { %15 = sbr.rel (!%p13_p5) target bundleno = 2 (0x2), region = 99 }

// kernel: reverse.1
= control target key start
LH: loop header
LB: loop body
LE: loop exit
PB: predicated region body
PF: predicated region fallthrough
CT: control target
= control target key end

     0   :  { %s1352_s0 = inlined_call_operand.vmem [shape: f32[2,4,16,16,7], index: 0, kind: input, shape index: {}]   ;;  %s1353_s1 = inlined_call_operand.vmem [shape: f32[2,4,16,16,7], index: 1, kind: output, shape index: {}]  }
   0x1   :  { %v448_v0 = vld [vmem:[%s1352_s0 + $0x60] sm:$0xff]  ;;  %v451_v2 = vld [vmem:[%s1352_s0 + $0xd0] sm:$0xff]  ;;  %v558_v56 = vld [vmem:[%s1352_s0 + $0x68] sm:$0xff] }
   0x2   :  { %v449_v1 = vld [vmem:[%s1352_s0 + $0x220] sm:$0xff]  ;;  %4 = vst [vmem:[%s1353_s1] sm:$0xff] %v448_v0  ;;  %452 = vst [vmem:[%s1353_s1 + $0x70] sm:$0xff] %v451_v2  ;;  %v453_v3 = vld [vmem:[%s1352_s0 + $0x290] sm:$0xff] }
   0x3   :  { %450 = vst [vmem:[%s1353_s1 + $0x1c0] sm:$0xff] %v449_v1  ;;  %v455_v4 = vld [vmem:[%s1352_s0 + $0x140] sm:$0xff]  ;;  %454 = vst [vmem:[%s1353_s1 + $0x230] sm:$0xff] %v453_v3  ;;  %v459_v6 = vld [vmem:[%s1352_s0 + $0x1b0] sm:$0xff] }
   0x4   :  { %v457_v5 = vld [vmem:[%s1352_s0 + $0x300] sm:$0xff]  ;;  %456 = vst [vmem:[%s1353_s1 + $0xe0] sm:$0xff] %v455_v4  ;;  %v461_v7 = vld [vmem:[%s1352_s0 + $0x370] sm:$0xff]  ;;  %460 = vst [vmem:[%s1353_s1 + $0x150] sm:$0xff] %v459_v6 }
   0x5   :  { %458 = vst [vmem:[%s1353_s1 + $0x2a0] sm:$0xff] %v457_v5  ;;  %v463_v8 = vld [vmem:[%s1352_s0 + $0x50] sm:$0xff]  ;;  %462 = vst [vmem:[%s1353_s1 + $0x310] sm:$0xff] %v461_v7  ;;  %v467_v10 = vld [vmem:[%s1352_s0 + $0xc0] sm:$0xff] }
   0x6   :  { %464 = vst [vmem:[%s1353_s1 + $0x10] sm:$0xff] %v463_v8  ;;  %v465_v9 = vld [vmem:[%s1352_s0 + $0x210] sm:$0xff]  ;;  %v469_v11 = vld [vmem:[%s1352_s0 + $0x280] sm:$0xff]  ;;  %468 = vst [vmem:[%s1353_s1 + $0x80] sm:$0xff] %v467_v10 }
   0x7   :  { %466 = vst [vmem:[%s1353_s1 + $0x1d0] sm:$0xff] %v465_v9  ;;  %470 = vst [vmem:[%s1353_s1 + $0x240] sm:$0xff] %v469_v11  ;;  %v471_v12 = vld [vmem:[%s1352_s0 + $0x130] sm:$0xff]  ;;  %v475_v14 = vld [vmem:[%s1352_s0 + $0x1a0] sm:$0xff] }
   0x8   :  { %v473_v13 = vld [vmem:[%s1352_s0 + $0x2f0] sm:$0xff]  ;;  %472 = vst [vmem:[%s1353_s1 + $0xf0] sm:$0xff] %v471_v12  ;;  %476 = vst [vmem:[%s1353_s1 + $0x160] sm:$0xff] %v475_v14  ;;  %v477_v15 = vld [vmem:[%s1352_s0 + $0x360] sm:$0xff] }
   0x9   :  { %474 = vst [vmem:[%s1353_s1 + $0x2b0] sm:$0xff] %v473_v13  ;;  %v479_v16 = vld [vmem:[%s1352_s0 + $0x40] sm:$0xff]  ;;  %478 = vst [vmem:[%s1353_s1 + $0x320] sm:$0xff] %v477_v15  ;;  %v483_v18 = vld [vmem:[%s1352_s0 + $0xb0] sm:$0xff] }
   0xa   :  { %v481_v17 = vld [vmem:[%s1352_s0 + $0x200] sm:$0xff]  ;;  %480 = vst [vmem:[%s1353_s1 + $0x20] sm:$0xff] %v479_v16  ;;  %v485_v19 = vld [vmem:[%s1352_s0 + $0x270] sm:$0xff]  ;;  %484 = vst [vmem:[%s1353_s1 + $0x90] sm:$0xff] %v483_v18 }
   0xb   :  { %482 = vst [vmem:[%s1353_s1 + $0x1e0] sm:$0xff] %v481_v17  ;;  %v487_v20 = vld [vmem:[%s1352_s0 + $0x120] sm:$0xff]  ;;  %486 = vst [vmem:[%s1353_s1 + $0x250] sm:$0xff] %v485_v19  ;;  %v491_v22 = vld [vmem:[%s1352_s0 + $0x190] sm:$0xff] }
   0xc   :  { %488 = vst [vmem:[%s1353_s1 + $0x100] sm:$0xff] %v487_v20  ;;  %v489_v21 = vld [vmem:[%s1352_s0 + $0x2e0] sm:$0xff]  ;;  %v493_v23 = vld [vmem:[%s1352_s0 + $0x350] sm:$0xff]  ;;  %492 = vst [vmem:[%s1353_s1 + $0x170] sm:$0xff] %v491_v22 }
   0xd   :  { %490 = vst [vmem:[%s1353_s1 + $0x2c0] sm:$0xff] %v489_v21  ;;  %494 = vst [vmem:[%s1353_s1 + $0x330] sm:$0xff] %v493_v23  ;;  %v495_v24 = vld [vmem:[%s1352_s0 + $0x30] sm:$0xff]  ;;  %v499_v26 = vld [vmem:[%s1352_s0 + $0xa0] sm:$0xff] }
   0xe   :  { %v497_v25 = vld [vmem:[%s1352_s0 + $0x1f0] sm:$0xff]  ;;  %496 = vst [vmem:[%s1353_s1 + $0x30] sm:$0xff] %v495_v24  ;;  %500 = vst [vmem:[%s1353_s1 + $0xa0] sm:$0xff] %v499_v26  ;;  %v501_v27 = vld [vmem:[%s1352_s0 + $0x260] sm:$0xff] }
   0xf   :  { %498 = vst [vmem:[%s1353_s1 + $0x1f0] sm:$0xff] %v497_v25  ;;  %v503_v28 = vld [vmem:[%s1352_s0 + $0x110] sm:$0xff]  ;;  %502 = vst [vmem:[%s1353_s1 + $0x260] sm:$0xff] %v501_v27  ;;  %v507_v30 = vld [vmem:[%s1352_s0 + $0x180] sm:$0xff] }
  0x10   :  { %v505_v29 = vld [vmem:[%s1352_s0 + $0x2d0] sm:$0xff]  ;;  %504 = vst [vmem:[%s1353_s1 + $0x110] sm:$0xff] %v503_v28  ;;  %v509_v31 = vld [vmem:[%s1352_s0 + $0x340] sm:$0xff]  ;;  %508 = vst [vmem:[%s1353_s1 + $0x180] sm:$0xff] %v507_v30 }
  0x11   :  { %506 = vst [vmem:[%s1353_s1 + $0x2d0] sm:$0xff] %v505_v29  ;;  %v511_v32 = vld [vmem:[%s1352_s0 + $0x20] sm:$0xff]  ;;  %510 = vst [vmem:[%s1353_s1 + $0x340] sm:$0xff] %v509_v31  ;;  %v515_v34 = vld [vmem:[%s1352_s0 + $0x90] sm:$0xff] }
  0x12   :  { %512 = vst [vmem:[%s1353_s1 + $0x40] sm:$0xff] %v511_v32  ;;  %v513_v33 = vld [vmem:[%s1352_s0 + $0x1e0] sm:$0xff]  ;;  %v517_v35 = vld [vmem:[%s1352_s0 + $0x250] sm:$0xff]  ;;  %516 = vst [vmem:[%s1353_s1 + $0xb0] sm:$0xff] %v515_v34 }
  0x13   :  { %514 = vst [vmem:[%s1353_s1 + $0x200] sm:$0xff] %v513_v33  ;;  %518 = vst [vmem:[%s1353_s1 + $0x270] sm:$0xff] %v517_v35  ;;  %v519_v36 = vld [vmem:[%s1352_s0 + $0x100] sm:$0xff]  ;;  %v523_v38 = vld [vmem:[%s1352_s0 + $0x170] sm:$0xff] }
  0x14   :  { %v521_v37 = vld [vmem:[%s1352_s0 + $0x2c0] sm:$0xff]  ;;  %520 = vst [vmem:[%s1353_s1 + $0x120] sm:$0xff] %v519_v36  ;;  %524 = vst [vmem:[%s1353_s1 + $0x190] sm:$0xff] %v523_v38  ;;  %v525_v39 = vld [vmem:[%s1352_s0 + $0x330] sm:$0xff] }
  0x15   :  { %522 = vst [vmem:[%s1353_s1 + $0x2e0] sm:$0xff] %v521_v37  ;;  %v527_v40 = vld [vmem:[%s1352_s0 + $0x10] sm:$0xff]  ;;  %526 = vst [vmem:[%s1353_s1 + $0x350] sm:$0xff] %v525_v39  ;;  %v531_v42 = vld [vmem:[%s1352_s0 + $0x80] sm:$0xff] }
  0x16   :  { %v529_v41 = vld [vmem:[%s1352_s0 + $0x1d0] sm:$0xff]  ;;  %528 = vst [vmem:[%s1353_s1 + $0x50] sm:$0xff] %v527_v40  ;;  %v533_v43 = vld [vmem:[%s1352_s0 + $0x240] sm:$0xff]  ;;  %532 = vst [vmem:[%s1353_s1 + $0xc0] sm:$0xff] %v531_v42 }
  0x17   :  { %530 = vst [vmem:[%s1353_s1 + $0x210] sm:$0xff] %v529_v41  ;;  %v535_v44 = vld [vmem:[%s1352_s0 + $0xf0] sm:$0xff]  ;;  %534 = vst [vmem:[%s1353_s1 + $0x280] sm:$0xff] %v533_v43  ;;  %v539_v46 = vld [vmem:[%s1352_s0 + $0x160] sm:$0xff] }
  0x18   :  { %536 = vst [vmem:[%s1353_s1 + $0x130] sm:$0xff] %v535_v44  ;;  %v537_v45 = vld [vmem:[%s1352_s0 + $0x2b0] sm:$0xff]  ;;  %v541_v47 = vld [vmem:[%s1352_s0 + $0x320] sm:$0xff]  ;;  %540 = vst [vmem:[%s1353_s1 + $0x1a0] sm:$0xff] %v539_v46 }
  0x19   :  { %538 = vst [vmem:[%s1353_s1 + $0x2f0] sm:$0xff] %v537_v45  ;;  %542 = vst [vmem:[%s1353_s1 + $0x360] sm:$0xff] %v541_v47  ;;  %v193_v48 = vld [vmem:[%s1352_s0] sm:$0xff]  ;;  %v546_v50 = vld [vmem:[%s1352_s0 + $0x70] sm:$0xff] }
  0x1a   :  { %v544_v49 = vld [vmem:[%s1352_s0 + $0x1c0] sm:$0xff]  ;;  %543 = vst [vmem:[%s1353_s1 + $0x60] sm:$0xff] %v193_v48  ;;  %547 = vst [vmem:[%s1353_s1 + $0xd0] sm:$0xff] %v546_v50  ;;  %v548_v51 = vld [vmem:[%s1352_s0 + $0x230] sm:$0xff] }
  0x1b   :  { %545 = vst [vmem:[%s1353_s1 + $0x220] sm:$0xff] %v544_v49  ;;  %v550_v52 = vld [vmem:[%s1352_s0 + $0xe0] sm:$0xff]  ;;  %549 = vst [vmem:[%s1353_s1 + $0x290] sm:$0xff] %v548_v51  ;;  %v554_v54 = vld [vmem:[%s1352_s0 + $0x150] sm:$0xff] }
  0x1c   :  { %v552_v53 = vld [vmem:[%s1352_s0 + $0x2a0] sm:$0xff]  ;;  %551 = vst [vmem:[%s1353_s1 + $0x140] sm:$0xff] %v550_v52  ;;  %v556_v55 = vld [vmem:[%s1352_s0 + $0x310] sm:$0xff]  ;;  %555 = vst [vmem:[%s1353_s1 + $0x1b0] sm:$0xff] %v554_v54 }
  0x1d   :  { %553 = vst [vmem:[%s1353_s1 + $0x300] sm:$0xff] %v552_v53  ;;  %557 = vst [vmem:[%s1353_s1 + $0x370] sm:$0xff] %v556_v55  ;;  %v560_v57 = vld [vmem:[%s1352_s0 + $0x228] sm:$0xff]  ;;  %v562_v58 = vld [vmem:[%s1352_s0 + $0xd8] sm:$0xff] }
  0x1e   :  { %559 = vst [vmem:[%s1353_s1 + $0x8] sm:$0xff] %v558_v56  ;;  %v564_v59 = vld [vmem:[%s1352_s0 + $0x298] sm:$0xff]  ;;  %561 = vst [vmem:[%s1353_s1 + $0x1c8] sm:$0xff] %v560_v57  ;;  %v566_v60 = vld [vmem:[%s1352_s0 + $0x148] sm:$0xff] }
  0x1f   :  { %563 = vst [vmem:[%s1353_s1 + $0x78] sm:$0xff] %v562_v58  ;;  %565 = vst [vmem:[%s1353_s1 + $0x238] sm:$0xff] %v564_v59  ;;  %v568_v61 = vld [vmem:[%s1352_s0 + $0x308] sm:$0xff]  ;;  %v570_v62 = vld [vmem:[%s1352_s0 + $0x1b8] sm:$0xff] }
  0x20   :  { %567 = vst [vmem:[%s1353_s1 + $0xe8] sm:$0xff] %v566_v60  ;;  %569 = vst [vmem:[%s1353_s1 + $0x2a8] sm:$0xff] %v568_v61  ;;  %v572_v63 = vld [vmem:[%s1352_s0 + $0x378] sm:$0xff]  ;;  %v578_v2 = vld [vmem:[%s1352_s0 + $0xc8] sm:$0xff] }
  0x21   :  { %571 = vst [vmem:[%s1353_s1 + $0x158] sm:$0xff] %v570_v62  ;;  %v574_v0 = vld [vmem:[%s1352_s0 + $0x58] sm:$0xff]  ;;  %573 = vst [vmem:[%s1353_s1 + $0x318] sm:$0xff] %v572_v63  ;;  %v580_v3 = vld [vmem:[%s1352_s0 + $0x288] sm:$0xff] }
  0x22   :  { %v576_v1 = vld [vmem:[%s1352_s0 + $0x218] sm:$0xff]  ;;  %575 = vst [vmem:[%s1353_s1 + $0x18] sm:$0xff] %v574_v0  ;;  %579 = vst [vmem:[%s1353_s1 + $0x88] sm:$0xff] %v578_v2  ;;  %v586_v6 = vld [vmem:[%s1352_s0 + $0x1a8] sm:$0xff] }
  0x23   :  { %577 = vst [vmem:[%s1353_s1 + $0x1d8] sm:$0xff] %v576_v1  ;;  %v582_v4 = vld [vmem:[%s1352_s0 + $0x138] sm:$0xff]  ;;  %581 = vst [vmem:[%s1353_s1 + $0x248] sm:$0xff] %v580_v3  ;;  %v588_v7 = vld [vmem:[%s1352_s0 + $0x368] sm:$0xff] }
  0x24   :  { %583 = vst [vmem:[%s1353_s1 + $0xf8] sm:$0xff] %v582_v4  ;;  %v584_v5 = vld [vmem:[%s1352_s0 + $0x2f8] sm:$0xff]  ;;  %587 = vst [vmem:[%s1353_s1 + $0x168] sm:$0xff] %v586_v6  ;;  %v590_v8 = vld [vmem:[%s1352_s0 + $0x48] sm:$0xff] }
  0x25   :  { %585 = vst [vmem:[%s1353_s1 + $0x2b8] sm:$0xff] %v584_v5  ;;  %589 = vst [vmem:[%s1353_s1 + $0x328] sm:$0xff] %v588_v7  ;;  %v592_v9 = vld [vmem:[%s1352_s0 + $0x208] sm:$0xff]  ;;  %v594_v10 = vld [vmem:[%s1352_s0 + $0xb8] sm:$0xff] }
  0x26   :  { %591 = vst [vmem:[%s1353_s1 + $0x28] sm:$0xff] %v590_v8  ;;  %593 = vst [vmem:[%s1353_s1 + $0x1e8] sm:$0xff] %v592_v9  ;;  %v596_v11 = vld [vmem:[%s1352_s0 + $0x278] sm:$0xff]  ;;  %v598_v12 = vld [vmem:[%s1352_s0 + $0x128] sm:$0xff] }
  0x27   :  { %595 = vst [vmem:[%s1353_s1 + $0x98] sm:$0xff] %v594_v10  ;;  %v600_v13 = vld [vmem:[%s1352_s0 + $0x2e8] sm:$0xff]  ;;  %597 = vst [vmem:[%s1353_s1 + $0x258] sm:$0xff] %v596_v11  ;;  %v602_v14 = vld [vmem:[%s1352_s0 + $0x198] sm:$0xff] }
  0x28   :  { %599 = vst [vmem:[%s1353_s1 + $0x108] sm:$0xff] %v598_v12  ;;  %601 = vst [vmem:[%s1353_s1 + $0x2c8] sm:$0xff] %v600_v13  ;;  %v604_v15 = vld [vmem:[%s1352_s0 + $0x358] sm:$0xff]  ;;  %v610_v18 = vld [vmem:[%s1352_s0 + $0xa8] sm:$0xff] }
  0x29   :  { %v606_v16 = vld [vmem:[%s1352_s0 + $0x38] sm:$0xff]  ;;  %603 = vst [vmem:[%s1353_s1 + $0x178] sm:$0xff] %v602_v14  ;;  %605 = vst [vmem:[%s1353_s1 + $0x338] sm:$0xff] %v604_v15  ;;  %v612_v19 = vld [vmem:[%s1352_s0 + $0x268] sm:$0xff] }
  0x2a   :  { %607 = vst [vmem:[%s1353_s1 + $0x38] sm:$0xff] %v606_v16  ;;  %v608_v17 = vld [vmem:[%s1352_s0 + $0x1f8] sm:$0xff]  ;;  %611 = vst [vmem:[%s1353_s1 + $0xa8] sm:$0xff] %v610_v18  ;;  %v618_v22 = vld [vmem:[%s1352_s0 + $0x188] sm:$0xff] }
  0x2b   :  { %609 = vst [vmem:[%s1353_s1 + $0x1f8] sm:$0xff] %v608_v17  ;;  %613 = vst [vmem:[%s1353_s1 + $0x268] sm:$0xff] %v612_v19  ;;  %v614_v20 = vld [vmem:[%s1352_s0 + $0x118] sm:$0xff]  ;;  %v620_v23 = vld [vmem:[%s1352_s0 + $0x348] sm:$0xff] }
  0x2c   :  { %v616_v21 = vld [vmem:[%s1352_s0 + $0x2d8] sm:$0xff]  ;;  %615 = vst [vmem:[%s1353_s1 + $0x118] sm:$0xff] %v614_v20  ;;  %619 = vst [vmem:[%s1353_s1 + $0x188] sm:$0xff] %v618_v22  ;;  %v622_v24 = vld [vmem:[%s1352_s0 + $0x28] sm:$0xff] }
  0x2d   :  { %617 = vst [vmem:[%s1353_s1 + $0x2d8] sm:$0xff] %v616_v21  ;;  %v624_v25 = vld [vmem:[%s1352_s0 + $0x1e8] sm:$0xff]  ;;  %621 = vst [vmem:[%s1353_s1 + $0x348] sm:$0xff] %v620_v23  ;;  %v626_v26 = vld [vmem:[%s1352_s0 + $0x98] sm:$0xff] }
  0x2e   :  { %623 = vst [vmem:[%s1353_s1 + $0x48] sm:$0xff] %v622_v24  ;;  %625 = vst [vmem:[%s1353_s1 + $0x208] sm:$0xff] %v624_v25  ;;  %v628_v27 = vld [vmem:[%s1352_s0 + $0x258] sm:$0xff]  ;;  %v630_v28 = vld [vmem:[%s1352_s0 + $0x108] sm:$0xff] }
  0x2f   :  { %627 = vst [vmem:[%s1353_s1 + $0xb8] sm:$0xff] %v626_v26  ;;  %629 = vst [vmem:[%s1353_s1 + $0x278] sm:$0xff] %v628_v27  ;;  %v632_v29 = vld [vmem:[%s1352_s0 + $0x2c8] sm:$0xff]  ;;  %v634_v30 = vld [vmem:[%s1352_s0 + $0x178] sm:$0xff] }
  0x30   :  { %631 = vst [vmem:[%s1353_s1 + $0x128] sm:$0xff] %v630_v28  ;;  %v636_v31 = vld [vmem:[%s1352_s0 + $0x338] sm:$0xff]  ;;  %633 = vst [vmem:[%s1353_s1 + $0x2e8] sm:$0xff] %v632_v29  ;;  %v642_v34 = vld [vmem:[%s1352_s0 + $0x88] sm:$0xff] }
  0x31   :  { %635 = vst [vmem:[%s1353_s1 + $0x198] sm:$0xff] %v634_v30  ;;  %637 = vst [vmem:[%s1353_s1 + $0x358] sm:$0xff] %v636_v31  ;;  %v638_v32 = vld [vmem:[%s1352_s0 + $0x18] sm:$0xff]  ;;  %v644_v35 = vld [vmem:[%s1352_s0 + $0x248] sm:$0xff] }
  0x32   :  { %v640_v33 = vld [vmem:[%s1352_s0 + $0x1d8] sm:$0xff]  ;;  %639 = vst [vmem:[%s1353_s1 + $0x58] sm:$0xff] %v638_v32  ;;  %643 = vst [vmem:[%s1353_s1 + $0xc8] sm:$0xff] %v642_v34  ;;  %v650_v38 = vld [vmem:[%s1352_s0 + $0x168] sm:$0xff] }
  0x33   :  { %641 = vst [vmem:[%s1353_s1 + $0x218] sm:$0xff] %v640_v33  ;;  %v646_v36 = vld [vmem:[%s1352_s0 + $0xf8] sm:$0xff]  ;;  %645 = vst [vmem:[%s1353_s1 + $0x288] sm:$0xff] %v644_v35  ;;  %v652_v39 = vld [vmem:[%s1352_s0 + $0x328] sm:$0xff] }
  0x34   :  { %v648_v37 = vld [vmem:[%s1352_s0 + $0x2b8] sm:$0xff]  ;;  %647 = vst [vmem:[%s1353_s1 + $0x138] sm:$0xff] %v646_v36  ;;  %v654_v40 = vld [vmem:[%s1352_s0 + $0x8] sm:$0xff]  ;;  %651 = vst [vmem:[%s1353_s1 + $0x1a8] sm:$0xff] %v650_v38 }
  0x35   :  { %649 = vst [vmem:[%s1353_s1 + $0x2f8] sm:$0xff] %v648_v37  ;;  %653 = vst [vmem:[%s1353_s1 + $0x368] sm:$0xff] %v652_v39  ;;  %v656_v41 = vld [vmem:[%s1352_s0 + $0x1c8] sm:$0xff]  ;;  %v658_v42 = vld [vmem:[%s1352_s0 + $0x78] sm:$0xff] }
  0x36   :  { %655 = vst [vmem:[%s1353_s1 + $0x68] sm:$0xff] %v654_v40  ;;  %v660_v43 = vld [vmem:[%s1352_s0 + $0x238] sm:$0xff]  ;;  %657 = vst [vmem:[%s1353_s1 + $0x228] sm:$0xff] %v656_v41  ;;  %v662_v44 = vld [vmem:[%s1352_s0 + $0xe8] sm:$0xff] }
  0x37   :  { %659 = vst [vmem:[%s1353_s1 + $0xd8] sm:$0xff] %v658_v42  ;;  %661 = vst [vmem:[%s1353_s1 + $0x298] sm:$0xff] %v660_v43  ;;  %v664_v45 = vld [vmem:[%s1352_s0 + $0x2a8] sm:$0xff]  ;;  %v666_v46 = vld [vmem:[%s1352_s0 + $0x158] sm:$0xff] }
  0x38   :  { %663 = vst [vmem:[%s1353_s1 + $0x148] sm:$0xff] %v662_v44  ;;  %665 = vst [vmem:[%s1353_s1 + $0x308] sm:$0xff] %v664_v45  ;;  %v668_v47 = vld [vmem:[%s1352_s0 + $0x318] sm:$0xff] }
  0x39   :  { %667 = vst [vmem:[%s1353_s1 + $0x1b8] sm:$0xff] %v666_v46  ;;  %669 = vst [vmem:[%s1353_s1 + $0x378] sm:$0xff] %v668_v47 }

</bundles_post_ra>
